<compile_context>
chip_gen: v7x
topology: tpu7x:2x2x1
jax: 0.10.0
libtpu: 0.0.40
codegen_flags: <defaults>
</compile_context>

<pallas_src>
import functools

import jax
import jax.numpy as jnp
from jax.experimental import pallas as pl
from jax.experimental.pallas import tpu as pltpu

_LN_EPS = 1e-5


def _round_up(x, m):
    return ((x + m - 1) // m) * m


def _vmem_capacity_bytes():
    """Physical VMEM of the current generation (conservative fallback)."""
    try:
        info = pltpu.get_tpu_info()
        cap = getattr(info, "vmem_capacity_bytes", None)
        if cap:
            return int(cap)
    except Exception:
        pass
    return 64 << 20          # v7x physical VMEM (smallest current generation)


def _resident(shape):
    """Constant operand: full array, constant index_map, single-buffered."""
    idx = lambda *_: (0,) * len(shape)
    try:
        return pl.BlockSpec(shape, idx, pipeline_mode=pl.Buffered(1))
    except TypeError:        # older jax without pipeline_mode kwarg
        return pl.BlockSpec(shape, idx)


def _choose_tiles(T, B, per_row_bytes, tile_budget_bytes, sub32_out):
    """Pick (TT, TB): TT timesteps x TB batch rows per grid step.  The kernel
    flattens them to M = TT*TB MXU rows; aim for >=256 rows (full 256x256 MXU
    on v6e/v7x) and up to ~1024 to amortize ~0.35us/step overhead, bounded by
    the VMEM tile budget."""
    max_rows = max(int(tile_budget_bytes // max(per_row_bytes, 1)), 8)
    target_rows = min(max_rows, 1024)
    if B >= target_rows:
        tb = min(B, target_rows)
        if tb >= 256:
            tb = (tb // 256) * 256          # MXU-aligned batch tile
        elif tb >= 128:
            tb = (tb // 128) * 128
        else:
            g = 16 if sub32_out else 8      # bf16 sublane packing
            tb = max(g, (tb // g) * g)
        return 1, min(tb, B)
    tt = max(1, min(T, target_rows // max(B, 1)))
    if tt < T and tt >= 8:
        tt = (tt // 8) * 8                  # keep in-kernel pos slice aligned
    return tt, B


def _make_kernel(split_res, S_in, H, E_pad, TT, TB, inv_E, precision):
    M = TT * TB

    def kernel(x_ref, pos_ref, w_ref, b1_ref, w2_ref, b2_ref, g_ref, be_ref,
               o_ref):
        x = x_ref[...].reshape(M, S_in)
        xm = x if x.dtype == w_ref.dtype else x.astype(w_ref.dtype)

        # Fused Linear1 [+ residual projection]: a single MXU matmul.
        cat = jnp.dot(xm, w_ref[...], preferred_element_type=jnp.float32,
                      precision=precision)
        if split_res:
            h_pre = cat[:, :H]
            res = cat[:, H:]
        else:
            h_pre = cat
            res = x.astype(jnp.float32)      # nn.Identity() residual

        h = jnp.maximum(h_pre + b1_ref[...], 0.0)       # ReLU (Dropout = id)
        out = jnp.dot(h.astype(w2_ref.dtype), w2_ref[...],
                      preferred_element_type=jnp.float32,
                      precision=precision) + b2_ref[...]
        y = out + res

        # One-pass LayerNorm over the true embed width E (padded columns of y
        # are exactly zero, so plain row sums are correct); f32 statistics.
        s1 = jnp.sum(y, axis=-1, keepdims=True)
        s2 = jnp.sum(y * y, axis=-1, keepdims=True)
        mean = s1 * inv_E
        var = jnp.maximum(s2 * inv_E - mean * mean, 0.0)
        yn = (y - mean) * jax.lax.rsqrt(var + _LN_EPS)
        yn = yn * g_ref[...] + be_ref[...]

        # + learnable positional embedding for this block's timesteps.
        # FeatureDropout / Dropout are identity in eval mode.
        t0 = pl.multiple_of(pl.program_id(0) * TT, TT)
        p = pos_ref[pl.ds(t0, TT), :]                     # [TT, E_pad]
        o_ref[...] = (yn.reshape(TT, TB, E_pad) + p[:, None, :]).astype(
            o_ref.dtype)

    return kernel


@functools.partial(jax.jit, static_argnames=("matmul_dtype", "out_dtype"))
def state_embedding2_forward(x, params, *, matmul_dtype=jnp.float32,
                             out_dtype=jnp.float32):
    """x: [T, S] or [T, B, S] -> [T(, B), embed_dim] (eval StateEmbedding2)."""
    squeeze_batch = x.ndim == 2
    if squeeze_batch:
        x = x[:, None, :]
    T, B, S = x.shape
    max_len = params["pos"].shape[0]
    if T > max_len:
        raise ValueError(f"Sequence length {T} > max_len {max_len}")

    w1, w2 = params["w1"], params["w2"]
    H, E = int(w1.shape[1]), int(w2.shape[1])
    E_pad = _round_up(E, 128)              # lane-dense output blocks
    has_res = "wres" in params
    # Residual handling:
    #   * projection path       -> fuse wres into one [S, H+E_pad] weight
    #   * identity, E_pad == E  -> res = x inside the kernel (no extra matmul)
    #   * identity, E_pad != E  -> fuse a zero-padded identity [I_E | 0]
    split_res = has_res or (E_pad != E)

    w_item = jnp.dtype(matmul_dtype).itemsize
    x_item = jnp.dtype(x.dtype).itemsize
    o_item = jnp.dtype(out_dtype).itemsize

    def padE(a, axis):
        if E_pad == E:
            return a
        pads = [(0, 0)] * a.ndim
        pads[axis] = (0, E_pad - E)
        return jnp.pad(a, pads)

    # ---- pack / pad weights (all E-sized axes zero-padded to E_pad) ----
    w1m = w1.astype(matmul_dtype)
    if split_res:
        wres = params["wres"] if has_res else jnp.eye(S, E, dtype=jnp.float32)
        wcat = jnp.concatenate([w1m, padE(wres.astype(matmul_dtype), 1)],
                               axis=1)
    else:
        wcat = w1m
    w2p = padE(w2.astype(matmul_dtype), 1)
    b1 = params["b1"].reshape(1, H).astype(jnp.float32)
    b2 = padE(params["b2"].reshape(1, E).astype(jnp.float32), 1)
    gamma = padE(params["gamma"].reshape(1, E).astype(jnp.float32), 1)
    beta = padE(params["beta"].reshape(1, E).astype(jnp.float32), 1)
    pos = padE(params["pos"][:T].reshape(T, E).astype(jnp.float32), 1)

    # ---- generation-aware VMEM budget & tile sizing ----
    Hcat = int(wcat.shape[1])
    weight_bytes = ((S * Hcat + H * E_pad) * w_item
                    + (H + 3 * E_pad) * 4 + (T + 8) * E_pad * 4)
    cap = _vmem_capacity_bytes()
    base_limit = min(cap * 5 // 8, 100 << 20)   # ~40 MiB v7x, ~80 MiB v5e/v6e
    tile_budget = max(base_limit - weight_bytes - (4 << 20), 2 << 20)
    per_row = (2 * S * x_item + 2 * E_pad * o_item
               + 4 * (Hcat + H + 3 * E_pad) + w_item * (S + Hcat))
    TT, TB = _choose_tiles(T, B, per_row, tile_budget, o_item < 4)
    nT, nB = pl.cdiv(T, TT), pl.cdiv(B, TB)
    T_pad = nT * TT
    if T_pad != T:
        pos = jnp.pad(pos, ((0, T_pad - T), (0, 0)))
    est_need = weight_bytes + per_row * TT * TB + (6 << 20)
    vmem_limit = int(min(max(base_limit, est_need), cap))

    precision = (jax.lax.Precision.HIGHEST
                 if jnp.dtype(matmul_dtype) == jnp.float32 else None)
    kernel = _make_kernel(split_res, S, H, E_pad, TT, TB, 1.0 / E, precision)

    in_specs = [
        pl.BlockSpec((TT, TB, S), lambda i, j: (i, j, 0)),     # x tile
        _resident((T_pad, E_pad)),                             # pos (resident)
        _resident((S, Hcat)),                                  # [w1 | wres]
        _resident((1, H)),                                     # b1
        _resident((H, E_pad)),                                 # w2
        _resident((1, E_pad)),                                 # b2
        _resident((1, E_pad)),                                 # gamma
        _resident((1, E_pad)),                                 # beta
    ]

    # Advisory cost estimate (uses actual itemsizes).
    N = T * B
    flops = 2 * N * (S * Hcat + H * E_pad)
    bytes_accessed = (N * S * x_item + N * E_pad * o_item
                      + (S * Hcat + H * E_pad) * w_item
                      + (H + 3 * E_pad) * 4 + T_pad * E_pad * 4)

    out = pl.pallas_call(
        kernel,
        out_shape=jax.ShapeDtypeStruct((T, B, E_pad), out_dtype),
        grid=(nT, nB),
        in_specs=in_specs,
        out_specs=pl.BlockSpec((TT, TB, E_pad), lambda i, j: (i, j, 0)),
        compiler_params=pltpu.CompilerParams(
            dimension_semantics=("parallel", "parallel"),
            vmem_limit_bytes=vmem_limit),
        cost_estimate=pl.CostEstimate(flops=flops, transcendentals=N,
                                      bytes_accessed=bytes_accessed),
    )(x, pos, wcat, b1, w2p, b2, gamma, beta)

    if E_pad != E:
        out = out[..., :E]
    if squeeze_batch:
        out = out[:, 0, :]
    return out


def init_params(key, state_dim, embed_dim, max_len=20, hidden_multiplier=2):
    hidden_dim = hidden_multiplier * embed_dim
    ks = jax.random.split(key, 6)
    p = dict(
        w1=jax.random.normal(ks[0], (state_dim, hidden_dim), jnp.float32) * 0.1,
        b1=jax.random.normal(ks[1], (hidden_dim,), jnp.float32) * 0.01,
        w2=jax.random.normal(ks[2], (hidden_dim, embed_dim), jnp.float32) * 0.1,
        b2=jax.random.normal(ks[3], (embed_dim,), jnp.float32) * 0.01,
        gamma=jnp.ones((embed_dim,), jnp.float32),
        beta=jnp.zeros((embed_dim,), jnp.float32),
        pos=jax.random.normal(ks[5], (max_len, 1, embed_dim), jnp.float32) * 0.02,
    )
    if state_dim != embed_dim:          # nn.Identity() residual otherwise
        p["wres"] = jax.random.normal(
            ks[4], (state_dim, embed_dim), jnp.float32) * 0.1
    return p


def _reference(x, p):
    """Pure-JAX reference (eval-mode semantics)."""
    h = jnp.maximum(x @ p["w1"] + p["b1"], 0.0)
    out = h @ p["w2"] + p["b2"]
    res = x @ p["wres"] if "wres" in p else x
    y = out + res
    mean = y.mean(-1, keepdims=True)
    var = ((y - mean) ** 2).mean(-1, keepdims=True)
    y = (y - mean) / jnp.sqrt(var + _LN_EPS) * p["gamma"] + p["beta"]
    pos = p["pos"][: x.shape[0]]
    if x.ndim == 2:
        pos = pos[:, 0]
    return y + pos


if __name__ == "__main__":
    # Match reference matmul precision to the kernel's f32 (HIGHEST) path.
    jax.config.update("jax_default_matmul_precision", "highest")

    key = jax.random.PRNGKey(0)
    kx1, kp1, kx2, kp2, kx3, kp3 = jax.random.split(key, 6)

    # --- config 1: residual projection path (S != E), padded E (32 -> 128) ---
    T, B, S, E = 8, 2, 4, 32
    x1 = jax.random.normal(kx1, (T, B, S), jnp.float32)
    p1 = init_params(kp1, S, E, max_len=20, hidden_multiplier=2)
    o1 = jax.block_until_ready(state_embedding2_forward(x1, p1))
    r1 = _reference(x1, p1)
    assert o1.shape == (T, B, E)
    assert jnp.allclose(o1, r1, atol=2e-4, rtol=2e-4), "mismatch (proj path)"

    # --- config 2: identity residual (S == E), padded E (fused [I|0]) ---
    T2, B2, S2, E2 = 5, 16, 32, 32
    x2 = jax.random.normal(kx2, (T2, B2, S2), jnp.float32)
    p2 = init_params(kp2, S2, E2, max_len=20, hidden_multiplier=2)
    o2 = jax.block_until_ready(state_embedding2_forward(x2, p2))
    r2 = _reference(x2, p2)
    assert o2.shape == (T2, B2, E2)
    assert jnp.allclose(o2, r2, atol=2e-4, rtol=2e-4), "mismatch (id+pad path)"

    # --- config 3: identity residual, lane-dense E (no padding path) ---
    T3, B3, S3, E3 = 4, 8, 128, 128
    x3 = jax.random.normal(kx3, (T3, B3, S3), jnp.float32)
    p3 = init_params(kp3, S3, E3, max_len=20, hidden_multiplier=2)
    o3 = jax.block_until_ready(state_embedding2_forward(x3, p3))
    r3 = _reference(x3, p3)
    assert o3.shape == (T3, B3, E3)
    assert jnp.allclose(o3, r3, atol=2e-4, rtol=2e-4), "mismatch (id path)"

    # --- config 4: 2-D input [T, S] (module also supports this form) ---
    o4 = jax.block_until_ready(state_embedding2_forward(x1[:, 0, :], p1))
    r4 = _reference(x1[:, 0, :], p1)
    assert o4.shape == (T, E)
    assert jnp.allclose(o4, r4, atol=2e-4, rtol=2e-4), "mismatch (2-D path)"

    # --- config 5: bf16 MXU inputs + bf16 output (good on v5e/v6e/v7x) ---
    o5 = jax.block_until_ready(
        state_embedding2_forward(x1, p1, matmul_dtype=jnp.bfloat16,
                                 out_dtype=jnp.bfloat16))
    assert o5.shape == (T, B, E) and o5.dtype == jnp.bfloat16
    assert float(jnp.max(jnp.abs(o5.astype(jnp.float32) - r1))) < 0.1, \
        "bf16 path diverged"

    print("KERNEL_OK")
</pallas_src>

<mosaic_0001>
module attributes {stable_mosaic.version = 11 : i64} {
  func.func @kernel(%arg0: i32, %arg1: i32, %arg2: memref<8x2x4xf32, #tpu.memory_space<vmem>>, %arg3: memref<8x128xf32, #tpu.memory_space<vmem>>, %arg4: memref<4x192xf32, #tpu.memory_space<vmem>>, %arg5: memref<1x64xf32, #tpu.memory_space<vmem>>, %arg6: memref<64x128xf32, #tpu.memory_space<vmem>>, %arg7: memref<1x128xf32, #tpu.memory_space<vmem>>, %arg8: memref<1x128xf32, #tpu.memory_space<vmem>>, %arg9: memref<1x128xf32, #tpu.memory_space<vmem>>, %arg10: memref<8x2x128xf32, #tpu.memory_space<vmem>>) attributes {dimension_semantics = [#tpu.dimension_semantics<parallel>, #tpu.dimension_semantics<parallel>], iteration_bounds = array<i64: 1, 1>, scalar_prefetch = 0 : i64, scratch_operands = 0 : i64, tpu.core_type = #tpu.core_type<tc>, window_params = [{transform_indices = @transform_0, window_bounds = array<i64: 8, 2, 4>}, {pipeline_mode = #tpu.pipeline_mode<synchronous>, transform_indices = @transform_1, window_bounds = array<i64: 8, 128>}, {pipeline_mode = #tpu.pipeline_mode<synchronous>, transform_indices = @transform_2, window_bounds = array<i64: 4, 192>}, {pipeline_mode = #tpu.pipeline_mode<synchronous>, transform_indices = @transform_3, window_bounds = array<i64: 1, 64>}, {pipeline_mode = #tpu.pipeline_mode<synchronous>, transform_indices = @transform_4, window_bounds = array<i64: 64, 128>}, {pipeline_mode = #tpu.pipeline_mode<synchronous>, transform_indices = @transform_5, window_bounds = array<i64: 1, 128>}, {pipeline_mode = #tpu.pipeline_mode<synchronous>, transform_indices = @transform_6, window_bounds = array<i64: 1, 128>}, {pipeline_mode = #tpu.pipeline_mode<synchronous>, transform_indices = @transform_7, window_bounds = array<i64: 1, 128>}, {transform_indices = @transform_8, window_bounds = array<i64: 8, 2, 128>}]} {
    %c0 = arith.constant 0 : index
    %c0_0 = arith.constant 0 : index
    %c0_1 = arith.constant 0 : index
    %0 = vector.load %arg2[%c0, %c0_0, %c0_1] : memref<8x2x4xf32, #tpu.memory_space<vmem>>, vector<8x2x4xf32>
    %1 = vector.shape_cast %0 : vector<8x2x4xf32> to vector<16x4xf32>
    %c0_2 = arith.constant 0 : index
    %c0_3 = arith.constant 0 : index
    %2 = vector.load %arg4[%c0_2, %c0_3] : memref<4x192xf32, #tpu.memory_space<vmem>>, vector<4x192xf32>
    %cst = arith.constant dense<0.000000e+00> : vector<16x192xf32>
    %3 = tpu.matmul %1, %2, %cst {dimension_numbers = #tpu.dot_dimension_numbers<[1], [0], [0], [1], [0, 0, 1, 1], [], []>, precision = #tpu.contract_precision<fp32>} : vector<16x4xf32>, vector<4x192xf32>, vector<16x192xf32> -> vector<16x192xf32>
    %4 = vector.extract_strided_slice %3 {offsets = [0, 0], sizes = [16, 64], strides = [1, 1]} : vector<16x192xf32> to vector<16x64xf32>
    %5 = vector.extract_strided_slice %3 {offsets = [0, 64], sizes = [16, 128], strides = [1, 1]} : vector<16x192xf32> to vector<16x128xf32>
    %c0_4 = arith.constant 0 : index
    %c0_5 = arith.constant 0 : index
    %6 = vector.load %arg5[%c0_4, %c0_5] : memref<1x64xf32, #tpu.memory_space<vmem>>, vector<1x64xf32>
    %7 = vector.broadcast %6 : vector<1x64xf32> to vector<16x64xf32>
    %8 = arith.addf %4, %7 : vector<16x64xf32>
    %cst_6 = arith.constant 0.000000e+00 : f32
    %9 = vector.broadcast %cst_6 : f32 to vector<16x64xf32>
    %10 = arith.maximumf %8, %9 : vector<16x64xf32>
    %c0_7 = arith.constant 0 : index
    %c0_8 = arith.constant 0 : index
    %11 = vector.load %arg6[%c0_7, %c0_8] : memref<64x128xf32, #tpu.memory_space<vmem>>, vector<64x128xf32>
    %cst_9 = arith.constant dense<0.000000e+00> : vector<16x128xf32>
    %12 = tpu.matmul %10, %11, %cst_9 {dimension_numbers = #tpu.dot_dimension_numbers<[1], [0], [0], [1], [0, 0, 1, 1], [], []>, precision = #tpu.contract_precision<fp32>} : vector<16x64xf32>, vector<64x128xf32>, vector<16x128xf32> -> vector<16x128xf32>
    %c0_10 = arith.constant 0 : index
    %c0_11 = arith.constant 0 : index
    %13 = vector.load %arg7[%c0_10, %c0_11] : memref<1x128xf32, #tpu.memory_space<vmem>>, vector<1x128xf32>
    %14 = vector.broadcast %13 : vector<1x128xf32> to vector<16x128xf32>
    %15 = arith.addf %12, %14 : vector<16x128xf32>
    %16 = arith.addf %15, %5 : vector<16x128xf32>
    %cst_12 = arith.constant dense<0.000000e+00> : vector<16xf32>
    %17 = vector.multi_reduction <add>, %16, %cst_12 [1] : vector<16x128xf32> to vector<16xf32>
    %18 = vector.shape_cast %17 : vector<16xf32> to vector<16x1xf32>
    %19 = arith.mulf %16, %16 : vector<16x128xf32>
    %cst_13 = arith.constant dense<0.000000e+00> : vector<16xf32>
    %20 = vector.multi_reduction <add>, %19, %cst_13 [1] : vector<16x128xf32> to vector<16xf32>
    %21 = vector.shape_cast %20 : vector<16xf32> to vector<16x1xf32>
    %cst_14 = arith.constant 3.125000e-02 : f32
    %22 = vector.broadcast %cst_14 : f32 to vector<16x1xf32>
    %23 = arith.mulf %18, %22 : vector<16x1xf32>
    %cst_15 = arith.constant 3.125000e-02 : f32
    %24 = vector.broadcast %cst_15 : f32 to vector<16x1xf32>
    %25 = arith.mulf %21, %24 : vector<16x1xf32>
    %26 = arith.mulf %23, %23 : vector<16x1xf32>
    %27 = arith.subf %25, %26 : vector<16x1xf32>
    %cst_16 = arith.constant 0.000000e+00 : f32
    %28 = vector.broadcast %cst_16 : f32 to vector<16x1xf32>
    %29 = arith.maximumf %27, %28 : vector<16x1xf32>
    %30 = vector.broadcast %23 : vector<16x1xf32> to vector<16x128xf32>
    %31 = arith.subf %16, %30 : vector<16x128xf32>
    %cst_17 = arith.constant 9.99999974E-6 : f32
    %32 = vector.broadcast %cst_17 : f32 to vector<16x1xf32>
    %33 = arith.addf %29, %32 : vector<16x1xf32>
    %34 = math.rsqrt %33 : vector<16x1xf32>
    %35 = vector.broadcast %34 : vector<16x1xf32> to vector<16x128xf32>
    %36 = arith.mulf %31, %35 : vector<16x128xf32>
    %c0_18 = arith.constant 0 : index
    %c0_19 = arith.constant 0 : index
    %37 = vector.load %arg8[%c0_18, %c0_19] : memref<1x128xf32, #tpu.memory_space<vmem>>, vector<1x128xf32>
    %38 = vector.broadcast %37 : vector<1x128xf32> to vector<16x128xf32>
    %39 = arith.mulf %36, %38 : vector<16x128xf32>
    %c0_20 = arith.constant 0 : index
    %c0_21 = arith.constant 0 : index
    %40 = vector.load %arg9[%c0_20, %c0_21] : memref<1x128xf32, #tpu.memory_space<vmem>>, vector<1x128xf32>
    %41 = vector.broadcast %40 : vector<1x128xf32> to vector<16x128xf32>
    %42 = arith.addf %39, %41 : vector<16x128xf32>
    %c8_i32 = arith.constant 8 : i32
    %43 = arith.muli %arg0, %c8_i32 : i32
    %44 = tpu.assume_multiple %43, 8 : i32
    %45 = arith.index_cast %44 : i32 to index
    %c0_22 = arith.constant 0 : index
    %46 = vector.load %arg3[%45, %c0_22] : memref<8x128xf32, #tpu.memory_space<vmem>>, vector<8x128xf32>
    %47 = vector.shape_cast %42 : vector<16x128xf32> to vector<8x2x128xf32>
    %48 = vector.shape_cast %46 : vector<8x128xf32> to vector<8x1x128xf32>
    %49 = vector.broadcast %48 : vector<8x1x128xf32> to vector<8x2x128xf32>
    %50 = arith.addf %47, %49 : vector<8x2x128xf32>
    %c0_23 = arith.constant 0 : index
    %c0_24 = arith.constant 0 : index
    %c0_25 = arith.constant 0 : index
    %51 = vector.load %arg10[%c0_23, %c0_24, %c0_25] : memref<8x2x128xf32, #tpu.memory_space<vmem>>, vector<8x2x128xf32>
    tpu.vector_store %arg10[%c0_23, %c0_24, %c0_25], %50 {strides = array<i32>} : memref<8x2x128xf32, #tpu.memory_space<vmem>>, vector<8x2x128xf32>,
    return
  }
  func.func @transform_0(%arg0: i32, %arg1: i32) -> (i32, i32, i32) {
    %c0_i32 = arith.constant 0 : i32
    %c0_i32_0 = arith.constant 0 : i32
    return %arg0, %arg1, %c0_i32 : i32, i32, i32
  }
  func.func @transform_1(%arg0: i32, %arg1: i32) -> (i32, i32) {
    %c0_i32 = arith.constant 0 : i32
    %c0_i32_0 = arith.constant 0 : i32
    %c0_i32_1 = arith.constant 0 : i32
    return %c0_i32, %c0_i32_0 : i32, i32
  }
  func.func @transform_2(%arg0: i32, %arg1: i32) -> (i32, i32) {
    %c0_i32 = arith.constant 0 : i32
    %c0_i32_0 = arith.constant 0 : i32
    %c0_i32_1 = arith.constant 0 : i32
    return %c0_i32, %c0_i32_0 : i32, i32
  }
  func.func @transform_3(%arg0: i32, %arg1: i32) -> (i32, i32) {
    %c0_i32 = arith.constant 0 : i32
    %c0_i32_0 = arith.constant 0 : i32
    %c0_i32_1 = arith.constant 0 : i32
    return %c0_i32, %c0_i32_0 : i32, i32
  }
  func.func @transform_4(%arg0: i32, %arg1: i32) -> (i32, i32) {
    %c0_i32 = arith.constant 0 : i32
    %c0_i32_0 = arith.constant 0 : i32
    %c0_i32_1 = arith.constant 0 : i32
    return %c0_i32, %c0_i32_0 : i32, i32
  }
  func.func @transform_5(%arg0: i32, %arg1: i32) -> (i32, i32) {
    %c0_i32 = arith.constant 0 : i32
    %c0_i32_0 = arith.constant 0 : i32
    %c0_i32_1 = arith.constant 0 : i32
    return %c0_i32, %c0_i32_0 : i32, i32
  }
  func.func @transform_6(%arg0: i32, %arg1: i32) -> (i32, i32) {
    %c0_i32 = arith.constant 0 : i32
    %c0_i32_0 = arith.constant 0 : i32
    %c0_i32_1 = arith.constant 0 : i32
    return %c0_i32, %c0_i32_0 : i32, i32
  }
  func.func @transform_7(%arg0: i32, %arg1: i32) -> (i32, i32) {
    %c0_i32 = arith.constant 0 : i32
    %c0_i32_0 = arith.constant 0 : i32
    %c0_i32_1 = arith.constant 0 : i32
    return %c0_i32, %c0_i32_0 : i32, i32
  }
  func.func @transform_8(%arg0: i32, %arg1: i32) -> (i32, i32, i32) {
    %c0_i32 = arith.constant 0 : i32
    %c0_i32_0 = arith.constant 0 : i32
    return %arg0, %arg1, %c0_i32 : i32, i32, i32
  }
}

</mosaic_0001>

<bundles_post_ra>
// kernel: state_embedding2_forward.1
= control target key start
LH: loop header
LB: loop body
LE: loop exit
PB: predicated region body
PF: predicated region fallthrough
CT: control target
= control target key end

     0   :  { %vm88_vm0 = vcmask 1043456   ;;  %v52_v2 = vlaneseq  ;;  %v1796_v5 = vmov 0.0   ;;  %v1797_v14 = vmov 1983009808   ;;  %s2050_s0 = inlined_call_operand.vmem [shape: f32[8,2,4], index: 0, kind: input, shape index: {}]   ;;  %s2051_s1 = inlined_call_operand.vmem [shape: f32[8,128], index: 1, kind: input, shape index: {}]   ;;  %s2052_s2 = inlined_call_operand.vmem [shape: f32[4,192], index: 2, kind: input, shape index: {}]   ;;  %s2053_s3 = inlined_call_operand.vmem [shape: f32[1,64], index: 3, kind: input, shape index: {}]   ;;  %s2054_s4 = inlined_call_operand.vmem [shape: f32[64,128], index: 4, kind: input, shape index: {}]   ;;  %s2055_s5 = inlined_call_operand.vmem [shape: f32[1,128], index: 5, kind: input, shape index: {}]   ;;  %s2056_s6 = inlined_call_operand.vmem [shape: f32[1,128], index: 6, kind: input, shape index: {}]   ;;  %s2057_s7 = inlined_call_operand.vmem [shape: f32[1,128], index: 7, kind: input, shape index: {}]   ;;  %s2058_s8 = inlined_call_operand.hbm [shape: f32[8,2,128], index: 8, kind: output, shape index: {}]  }
   0x1   :  { %v38_v0 = vld [vmem:[%s2052_s2] sm:$0xff]  ;;  %256 = vmatprep.mubr.f32.mxu0 %v1796_v5  ;;  %159 = vmatprep.mubr.f32.mxu1 %v1796_v5  ;;  %v50_v15 = vunpack.c.l.s4 %v1797_v14  ;;  %v34_v16 = vld [vmem:[%s2050_s0 + $0x8] sm:$0x3]  ;;  %v35_v17 = vld [vmem:[%s2050_s0 + $0xa] sm:$0x3] }
   0x2   :  { %v30_v1 = vld [vmem:[%s2050_s0] sm:$0x3]  ;;  %v82_v3 = vcombine.high %v38_v0, %v38_v0  ;;  %v89_v4 = vsel %vm88_vm0, %v38_v0, 0  ;;  %v31_v6 = vld [vmem:[%s2050_s0 + $0x2] sm:$0x3]  ;;  %v1872_v11 = vshrl.u32 %v52_v2, 7  ;;  %v64_v24 = vcombine.low %v34_v16, %v35_v17 }
   0x3   :  { %v32_v7 = vld [vmem:[%s2050_s0 + $0x4] sm:$0x3]  ;;  %v1867_v9 = vand.u32 4294901760, %v89_v4  ;;  %v33_v10 = vld [vmem:[%s2050_s0 + $0x6] sm:$0x3]  ;;  %v47_v13 = vcombine.low %v30_v1, %v31_v6  ;;  %v1883_v18 = vld [vmem:[%s2054_s4 + $0x8] sm:$0xff]  ;;  %v51_v25 = vunpack.c.0.s8 %v50_v15 }
   0x4   :  { %v1865_v8 = vld [vmem:[%s2054_s4] sm:$0xff]  ;;  %v91_v12 = vsel %vm88_vm0, %v82_v3, 0  ;;  %v48_v21 = vcombine.low %v32_v7, %v33_v10  ;;  %v36_v22 = vld [vmem:[%s2050_s0 + $0xc] sm:$0x3]  ;;  %v37_v23 = vld [vmem:[%s2050_s0 + $0xe] sm:$0x3] }
   0x5   :  { %v1885_v19 = vand.u32 4294901760, %v91_v12  ;;  %v1888_v20 = vsub.f32 %v89_v4, %v1867_v9  ;;  %v65_v26 = vcombine.low %v36_v22, %v37_v23  ;;  %v641_v27 = vand.u32 4294901760, %v1865_v8 }
   0x6   :  { %v644_v28 = vand.u32 4294901760, %v1883_v18 }
   0x7   :  { %13 = vsyncpa [#allocation3], 0  ;;  %v183_v29 = vsub.f32 %v91_v12, %v1885_v19  ;;  %v190_v30 = vand.u32 4294901760, %v1888_v20  ;;  %94 = vmatprep.subr.mxu1 %v1885_v19  ;;  %v1902_v31 = vsub.s32 %v51_v25, %v1872_v11  ;;  %v1906_v32 = vsub.f32 %v1865_v8, %v641_v27  ;;  %v620_v59 = vld [vmem:[%s2054_s4 + $0x10] sm:$0xff]  ;;  %v621_v60 = vld [vmem:[%s2054_s4 + $0x18] sm:$0xff]  ;;  %s1798_s15 = smov 64  }
   0x8   :  { %96 = vmatpush1.msra.mxu1 %v1867_v9  ;;  %v1909_v33 = vsub.f32 %v1883_v18, %v644_v28  ;;  %vm83_vm1 = vcmask 31744   ;;  %v1929_v58 = vpack.c.bf16 %v644_v28, %v641_v27  ;;  %v647_v61 = vand.u32 4294901760, %v620_v59  ;;  %v622_v1 = vld [vmem:[%s2054_s4 + $0x20] sm:$0xff]  ;;  %v623_v2 = vld [vmem:[%s2054_s4 + $0x28] sm:$0xff]  ;;  %v624_v8 = vld [vmem:[%s2054_s4 + $0x30] sm:$0xff] }
   0x9   :  { %v184_v34 = vand.u32 4294901760, %v183_v29  ;;  %v191_v35 = vsub.f32 %v1888_v20, %v190_v30  ;;  %v55_v36 = vrot.slane %v47_v13, %v1902_v31  ;;  %v62_v37 = vrot.slane %v48_v21, %v1902_v31 }
   0xa   :  { %v72_v38 = vrot.slane %v64_v24, %v1902_v31  ;;  %v79_v39 = vrot.slane %v65_v26, %v1902_v31  ;;  %v1663_v41 = vpack.c.bf16 %v1909_v33, %v1906_v32  ;;  %v650_v62 = vand.u32 4294901760, %v621_v60 }
   0xb   :  { %v185_v40 = vsub.f32 %v183_v29, %v184_v34  ;;  %v192_v42 = vand.u32 4294901760, %v191_v35  ;;  %v63_v43 = vcombine.low %v55_v36, %v62_v37  ;;  %v1943_v63 = vsub.f32 %v620_v59, %v647_v61  ;;  %v1453_v59 = vld [vmem:[%s2053_s3] ss:$0 sm:$0xff] }
   0xc   :  { %v80_v44 = vcombine.low %v72_v38, %v79_v39  ;;  %1664 = vmatprep.subr.bf16.mxu1 %v1663_v41  ;;  %v1945_v0 = vsub.f32 %v621_v60, %v650_v62  ;;  %v653_v4 = vand.u32 4294901760, %v622_v1  ;;  %v1961_v10 = vpack.c.bf16 %v650_v62, %v647_v61 }
   0xd   :  { %v186_v45 = vand.u32 4294901760, %v185_v40  ;;  %v84_v46 = vsel %vm83_vm1, %v63_v43, 0  ;;  %v659_v13 = vand.u32 4294901760, %v624_v8  ;;  %v750_v26 = vand.u32 4294901760, %v1943_v63 }
   0xe   :  { %v86_v47 = vsel %vm83_vm1, %v80_v44, 0  ;;  %v160_v48 = vand.u32 4294901760, %v84_v46  ;;  %v1667_v3 = vpack.c.bf16 %v1945_v0, %v1943_v63  ;;  %v763_v6 = vsub.f32 %v622_v1, %v653_v4 }
   0xf   :  { %187 = vmatprep.subr.mxu0 %v186_v45  ;;  %v171_v49 = vand.u32 4294901760, %v86_v47  ;;  %v777_v15 = vsub.f32 %v624_v8, %v659_v13  ;;  %v757_v27 = vand.u32 4294901760, %v1945_v0  ;;  %vm633_vm2 = vcmask 523264  }
  0x10   :  { %193 = vmatpush1.msra.mxu0 %v192_v42  ;;  %v161_v50 = vsub.f32 %v84_v46, %v160_v48 }
  0x11   :  { %258 = vmatmul.mubr.f32.vlgmr.msra.gmra.mrb[0].mxu0 %v160_v48  ;;  %273 = vmatprep.subr.mxu0 %v183_v29  ;;  %v172_v51 = vsub.f32 %v86_v47, %v171_v49  ;;  %v751_v29 = vsub.f32 %v1943_v63, %v750_v26 }
  0x12   :  { %276 = vmatpush1.msra.mxu0 %v1888_v20  ;;  %263 = vmatprep.mubr.f32.mxu0 %v1796_v5  ;;  %v162_v52 = vand.u32 4294901760, %v161_v50  ;;  %v743_v20 = vand.u32 4294901760, %v1909_v33 }
  0x13   :  { %357 = vmatprep.subr.mxu0 %v1885_v19  ;;  %v173_v53 = vand.u32 4294901760, %v172_v51 }
  0x14   :  { %v163_v54 = vsub.f32 %v161_v50, %v162_v52  ;;  %v744_v23 = vsub.f32 %v1909_v33, %v743_v20 }
  0x15   :  { %265 = vmatmul.mubr.f32.gmra.mrb[2].mxu0 %v171_v49  ;;  %v174_v55 = vsub.f32 %v172_v51, %v173_v53 }
  0x16   :  { %339 = vmatprep.mubr.f32.mxu0 %v1796_v5  ;;  %v164_v56 = vand.u32 4294901760, %v163_v54  ;;  %v745_v25 = vand.u32 4294901760, %v744_v23 }
  0x17   :  { %v175_v57 = vand.u32 4294901760, %v174_v55 }
  0x18   :  { %165 = vmatmul.mubr.f32.vlgmr.msra.gmra.mrb[0].mxu1 %v164_v56 }
  0x19   :  { %342 = vmatmul.mubr.f32.vlgmr.msra.gmra.mrb[0].mxu0 %v161_v50  ;;  %170 = vmatprep.mubr.f32.mxu1 %v1796_v5  ;;  %v1699_v50 = vpack.c.bf16 %v757_v27, %v750_v26 }
  0x1a   :  { %359 = vmatpush1.msra.mxu0 %v1867_v9  ;;  %347 = vmatprep.mubr.f32.mxu0 %v1796_v5 }
  0x1b   :  { %444 = vmatprep.subr.mxu0 %v184_v34  ;;  %1666 = vmatpush3.bf16.msra.mxu1 %v1663_v41  ;;  %v764_v34 = vand.u32 4294901760, %v763_v6  ;;  %v778_v41 = vand.u32 4294901760, %v777_v15 }
  0x1c   :  { %176 = vmatmul.mubr.f32.gmra.mrb[2].mxu1 %v175_v57  ;;  %1668 = vmatprep.subr.bf16.mxu1 %v1667_v3 }
  0x1d   :  { %350 = vmatmul.mubr.f32.gmra.mrb[2].mxu0 %v172_v51  ;;  %v765_v37 = vsub.f32 %v763_v6, %v764_v34  ;;  %v779_v44 = vsub.f32 %v777_v15, %v778_v41 }
  0x1e   :  { %422 = vmatprep.mubr.f32.mxu0 %v1796_v5 }
  0x1f   :  { %1670 = vmatpush3.bf16.msra.mxu1 %v1667_v3  ;;  %v766_v39 = vand.u32 4294901760, %v765_v37  ;;  %v780_v47 = vand.u32 4294901760, %v779_v44 }
  0x21   :  { %426 = vmatmul.mubr.f32.vlgmr.msra.gmra.mrb[0].mxu0 %v162_v52 }
  0x22   :  { %448 = vmatpush1.msra.mxu0 %v190_v30  ;;  %431 = vmatprep.mubr.f32.mxu0 %v1796_v5  ;;  %v758_v30 = vsub.f32 %v1945_v0, %v757_v27 }
  0x23   :  { %527 = vmatprep.subr.mxu0 %v1885_v19  ;;  %v736_v19 = vand.u32 4294901760, %v1906_v32 }
  0x24   :  { %v759_v33 = vand.u32 4294901760, %v758_v30 }
  0x25   :  { %435 = vmatmul.mubr.f32.gmra.mrb[2].mxu0 %v173_v53  ;;  %v737_v22 = vsub.f32 %v1906_v32, %v736_v19  ;;  %v752_v32 = vand.u32 4294901760, %v751_v29  ;;  %v1695_v46 = vpack.c.bf16 %v743_v20, %v736_v19 }
  0x26   :  { %511 = vmatprep.mubr.f32.mxu0 %v1796_v5 }
  0x27   :  { %v738_v24 = vand.u32 4294901760, %v737_v22  ;;  %v1985_v36 = vpack.c.bf16 %v759_v33, %v752_v32 }
  0x29   :  { %513 = vmatmul.mubr.f32.vlgmr.msra.gmra.mrb[0].mxu0 %v160_v48  ;;  %v1980_v28 = vpack.c.bf16 %v745_v25, %v738_v24 }
  0x2a   :  { %529 = vmatpush1.msra.mxu0 %v1867_v9  ;;  %518 = vmatprep.mubr.f32.mxu0 %v1796_v5  ;;  %v625_v9 = vld [vmem:[%s2054_s4 + $0x38] sm:$0xff] }
  0x2b   :  { %1632 = vmatprep.subr.bf16.mxu0 %v1929_v58  ;;  %v662_v14 = vand.u32 4294901760, %v625_v9 }
  0x2d   :  { %520 = vmatmul.mubr.f32.gmra.mrb[2].mxu0 %v171_v49  ;;  %v784_v16 = vsub.f32 %v625_v9, %v662_v14  ;;  %v1972_v21 = vpack.c.bf16 %v662_v14, %v659_v13 }
  0x2e   :  { %592 = vmatprep.mubr.f32.mxu0 %v1796_v5 }
  0x2f   :  { %v1675_v17 = vpack.c.bf16 %v784_v16, %v777_v15  ;;  %v785_v42 = vand.u32 4294901760, %v784_v16 }
  0x31   :  { %594 = vmatmul.mubr.f32.vlgmr.msra.gmra.mrb[0].mxu0 %v160_v48  ;;  %v786_v45 = vsub.f32 %v784_v16, %v785_v42  ;;  %v1989_v52 = vpack.c.bf16 %v785_v42, %v778_v41  ;;  %v1799_v42 = vmov 1966171168  }
  0x32   :  { %599 = vmatprep.mubr.f32.mxu0 %v1796_v5  ;;  %1634 = vmatpush3.bf16.msra.mxu0 %v1929_v58  ;;  %v656_v5 = vand.u32 4294901760, %v623_v2 }
  0x33   :  { %1636 = vmatprep.subr.bf16.mxu0 %v1961_v10  ;;  %v787_v48 = vand.u32 4294901760, %v786_v45 }
  0x34   :  { %v770_v7 = vsub.f32 %v623_v2, %v656_v5  ;;  %v1965_v18 = vpack.c.bf16 %v656_v5, %v653_v4 }
  0x35   :  { %601 = vmatmul.mubr.f32.gmra.mrb[2].mxu0 %v171_v49  ;;  %v1659_v49 = vpack.c.bf16 %v787_v48, %v780_v47 }
  0x36   :  { %v1671_v12 = vpack.c.bf16 %v770_v7, %v763_v6  ;;  %1638 = vmatpush3.bf16.msra.mxu0 %v1961_v10  ;;  %v771_v35 = vand.u32 4294901760, %v770_v7 }
  0x37   :  { %1640 = vmatprep.subr.bf16.mxu0 %v1965_v18 }
  0x38   :  { %1672 = vmatprep.subr.bf16.mxu1 %v1671_v12  ;;  %v772_v38 = vsub.f32 %v770_v7, %v771_v35  ;;  %v1987_v51 = vpack.c.bf16 %v771_v35, %v764_v34 }
  0x39   :  { %1674 = vmatpush3.bf16.msra.mxu1 %v1671_v12 }
  0x3a   :  { %1676 = vmatprep.subr.bf16.mxu1 %v1675_v17  ;;  %1642 = vmatpush3.bf16.msra.mxu0 %v1965_v18  ;;  %v773_v40 = vand.u32 4294901760, %v772_v38 }
  0x3b   :  { %1644 = vmatprep.subr.bf16.mxu0 %v1972_v21 }
  0x3c   :  { %v1655_v43 = vpack.c.bf16 %v773_v40, %v766_v39 }
  0x3d   :  { %1678 = vmatpush3.bf16.msra.mxu1 %v1675_v17 }
  0x3e   :  { %1680 = vmatprep.subr.bf16.mxu1 %v1929_v58  ;;  %1646 = vmatpush3.bf16.msra.mxu0 %v1972_v21 }
  0x3f   :  { %1648 = vmatprep.subr.bf16.mxu0 %v1980_v28 }
  0xeb   :  { %v166_v53 = vpop.f32.mrb[0].mxu1 }
  0xec   :  { %v168_v54 = vpop.f32.mrb[1].mxu1 }
  0xef   :  { %v177_v55 = vpop.f32.mrb[2].mxu1 }
  0xf0   :  { %v179_v56 = vpop.f32.mrb[3].mxu1 }
 0x104   :  { %v595_v57 = vpop.f32.mrb[0].mxu0 }
 0x105   :  { %v1727_v60 = vadd.f32 %v595_v57, %v166_v53  ;;  %v597_v61 = vpop.f32.mrb[1].mxu0  ;;  %v1286_v57 = vld [vmem:[%s2051_s1] sm:$0xff] }
 0x106   :  { %v1728_v62 = vadd.f32 %v597_v61, %v168_v54  ;;  %v1332_v61 = vcombine.high %v1286_v57, %v1286_v57 }
 0x107   :  { %v614_v63 = vadd.f32 %v1727_v60, %v1453_v59  ;;  %1224 = vrot.lane.b32.xlu0 %v1727_v60, %s1798_s15 }
 0x108   :  { %v602_v0 = vpop.f32.mrb[2].mxu0 }
 0x109   :  { %v616_v1 = vmax.f32 %v614_v63, 0.0  ;;  %v1729_v2 = vadd.f32 %v602_v0, %v177_v55  ;;  %v604_v3 = vpop.f32.mrb[3].mxu0 }
 0x10a   :  { %v1730_v4 = vadd.f32 %v604_v3, %v179_v56 }
 0x10b   :  { %v615_v5 = vadd.f32 %v1729_v2, %v1453_v59  ;;  %1226 = vrot.lane.b32.xlu0 %v1728_v62, %s1798_s15  ;;  %1228 = vrot.lane.b32.xlu1 %v1729_v2, %s1798_s15  ;;  %v635_v6 = vsel %vm633_vm2, %v616_v1, 0 }
 0x10c   :  { %v713_v7 = vand.u32 4294901760, %v635_v6 }
 0x10d   :  { %v617_v8 = vmax.f32 %v615_v5, 0.0 }
 0x10e   :  { %v714_v9 = vsub.f32 %v635_v6, %v713_v7 }
 0x10f   :  { %v638_v12 = vsel %vm633_vm2, %v617_v8, 0  ;;  %1230 = vrot.lane.b32.xlu1 %v1730_v4, %s1798_s15  ;;  %v1455_v4 = vld [vmem:[%s2056_s6] ss:$0 sm:$0xff]  ;;  %s1800_s6 = smov [#allocation2]  }
 0x110   :  { %v723_v13 = vand.u32 4294901760, %v638_v12  ;;  %1571 = vmatprep.mubr.f32.mxu1 %v714_v9  ;;  %v715_v14 = vand.u32 4294901760, %v714_v9 }
 0x112   :  { %v724_v15 = vsub.f32 %v638_v12, %v723_v13  ;;  %v716_v16 = vsub.f32 %v714_v9, %v715_v14  ;;  %v1456_v9 = vld [vmem:[%s2057_s7] ss:$0 sm:$0xff]  ;;  %s1442_s7 = sshll.u32 %s1800_s6, 4  ;;  %s1443_s7 = int_to_ptr.vmem [resolvable:$true] %s1442_s7 }
 0x113   :  { %s1772_s21 = scalar_lea.vmem %s1443_s7, 256  ;;  %p1777_p1 = scmp.lt.s32.totalorder %s1443_s7, %s1443_s7 }
 0x114   :  { %v725_v17 = vand.u32 4294901760, %v724_v15  ;;  %1572 = vmatmul.mubr.f32.vlgmr.msra.gmra.mrb[4].mxu1 %v724_v15  ;;  %v717_v19 = vand.u32 4294901760, %v716_v16  ;;  %p1773_p0 = scmp.ne.s32.totalorder %s1443_s7, %s1772_s21  ;;  %p1778_p2 = scmp.lt.s32.totalorder %s1772_s21, %s1772_s21 }
 0x115   :  { %1682 = vmatpush3.bf16.msra.mxu1 %v1929_v58  ;;  %1590 = vmatprep.mubr.f32.mxu1 %v715_v14 }
 0x116   :  { %v726_v20 = vsub.f32 %v724_v15, %v725_v17  ;;  %1533 = vmatprep.mubr.f32.mxu0 %v717_v19  ;;  %1684 = vmatprep.subr.bf16.mxu1 %v1961_v10  ;;  %p1779_p3 = por %p1778_p2, %p1777_p1 }
 0x118   :  { %v727_v22 = vand.u32 4294901760, %v726_v20  ;;  %p1780_p4 = pnand %p1779_p3, %p1773_p0 }
 0x119   :  { %1686 = vmatpush3.bf16.msra.mxu1 %v1961_v10 }
 0x11a   :  { %1534 = vmatmul.mubr.f32.vlgmr.msra.gmra.mrb[4].mxu0 %v727_v22  ;;  %1688 = vmatprep.subr.bf16.mxu1 %v1965_v18 }
 0x11b   :  { %1650 = vmatpush3.bf16.msra.mxu0 %v1980_v28  ;;  %1552 = vmatprep.mubr.f32.mxu0 %v713_v7 }
 0x11c   :  { %1652 = vmatprep.subr.bf16.mxu0 %v1985_v36 }
 0x11d   :  { %1690 = vmatpush3.bf16.msra.mxu1 %v1965_v18 }
 0x11e   :  { %1692 = vmatprep.subr.bf16.mxu1 %v1972_v21 }
 0x11f   :  { %1654 = vmatpush3.bf16.msra.mxu0 %v1985_v36 }
 0x120   :  { %1656 = vmatprep.subr.bf16.mxu0 %v1655_v43 }
 0x121   :  { %1694 = vmatpush3.bf16.msra.mxu1 %v1972_v21 }
 0x122   :  { %1696 = vmatprep.subr.bf16.mxu1 %v1695_v46 }
 0x123   :  { %1658 = vmatpush3.bf16.msra.mxu0 %v1655_v43  ;;  %v1334_v43 = vunpack.c.l.s4 %v1799_v42 }
 0x124   :  { %1591 = vmatmul.mubr.f32.vlgmr.msra.gmra.mrb[4].mxu1 %v725_v17  ;;  %1660 = vmatprep.subr.bf16.mxu0 %v1659_v49 }
 0x125   :  { %1698 = vmatpush3.bf16.msra.mxu1 %v1695_v46  ;;  %1609 = vmatprep.mubr.f32.mxu1 %v713_v7  ;;  %v1335_v48 = vunpack.c.0.s8 %v1334_v43 }
 0x126   :  { %1700 = vmatprep.subr.bf16.mxu1 %v1699_v50 }
 0x127   :  { %1662 = vmatpush3.bf16.msra.mxu0 %v1659_v49  ;;  %v1338_v54 = vsub.s32 %v1335_v48, %v1872_v11 }
 0x129   :  { %1702 = vmatpush3.bf16.msra.mxu1 %v1699_v50  ;;  %v1339_v60 = vrot.slane %v1286_v57, %v1338_v54  ;;  %v1346_v0 = vrot.slane %v1332_v61, %v1338_v54 }
 0x12a   :  { %1553 = vmatmul.mubr.f32.vlgmr.msra.gmra.mrb[4].mxu0 %v723_v13  ;;  %1704 = vmatprep.subr.bf16.mxu1 %v1987_v51 }
 0x12b   :  { %v1347_v63 = vcombine.high %v1339_v60, %v1339_v60  ;;  %v1355_v2 = vrot.slane %v1339_v60, %v1338_v54  ;;  %v1348_v6 = vcombine.high %v1346_v0, %v1346_v0  ;;  %v1362_v12 = vrot.slane %v1346_v0, %v1338_v54 }
 0x12d   :  { %1706 = vmatpush3.bf16.msra.mxu1 %v1987_v51  ;;  %v1369_v5 = vrot.slane %v1347_v63, %v1338_v54  ;;  %v1377_v14 = vcombine.high %v1355_v2, %v1355_v2  ;;  %v1376_v19 = vrot.slane %v1348_v6, %v1338_v54 }
 0x12e   :  { %1708 = vmatprep.subr.bf16.mxu1 %v1989_v52 }
 0x12f   :  { %v1379_v17 = vcombine.high %v1369_v5, %v1369_v5 }
 0x131   :  { %1710 = vmatpush3.bf16.msra.mxu1 %v1989_v52 }
 0x132   :  { %1712 = vmatprep.subr.bf16.mxu1 %v1929_v58 }
 0x134   :  { %1610 = vmatmul.mubr.f32.vlgmr.msra.gmra.mrb[4].mxu1 %v723_v13 }
 0x135   :  { %1714 = vmatpush3.bf16.msra.mxu1 %v1929_v58  ;;  %1628 = vmatprep.mubr.f32.mxu1 %v713_v7  ;;  %v1454_v58 = vld [vmem:[%s2055_s5] ss:$0 sm:$0xff]  ;;  %v1383_v7 = vsub.s32 0, %v1872_v11 }
 0x136   :  { %1716 = vmatprep.subr.bf16.mxu1 %v1961_v10 }
 0x137   :  { %v1384_v20 = vrot.slane %v1355_v2, %v1383_v7 }
 0x139   :  { %1718 = vmatpush3.bf16.msra.mxu1 %v1961_v10 }
 0x13a   :  { %1720 = vmatprep.subr.bf16.mxu1 %v1965_v18 }
 0x13d   :  { %1722 = vmatpush3.bf16.msra.mxu1 %v1965_v18 }
 0x13e   :  { %1724 = vmatprep.subr.bf16.mxu1 %v1972_v21 }
 0x141   :  { %1726 = vmatpush3.bf16.msra.mxu1 %v1972_v21 }
 0x144   :  { %1629 = vmatmul.mubr.f32.vlgmr.msra.gmra.mrb[4].mxu1 %v723_v13 }
 0x179   :  { %v1225_v26 = vpop.permute.xlu0 %1224 }
 0x17d   :  { %v1229_v25 = vpop.permute.xlu1 %1228  ;;  %v1227_v10 = vpop.permute.xlu0 %1226 }
 0x17e   :  { %v1232_v21 = vsel %vm633_vm2, %v1225_v26, %v1227_v10  ;;  %v1392_v26 = vrot.slane %v1377_v14, %v1383_v7  ;;  %v1380_v10 = vcombine.high %v1376_v19, %v1376_v19 }
 0x181   :  { %v1231_v27 = vpop.permute.xlu1 %1230 }
 0x182   :  { %v1233_v33 = vsel %vm633_vm2, %v1229_v25, %v1231_v27  ;;  %v1378_v25 = vcombine.high %v1362_v12, %v1362_v12 }
 0x1fd   :  { %v1554_v23 = vpop.f32.mrb[4].mxu0 }
 0x1fe   :  { %v840_v24 = vpop.f32.mrb[5].mxu0  ;;  %v1731_v28 = vadd.f32 %v1554_v23, %v1454_v58 }
 0x1ff   :  { %v1733_v29 = vadd.f32 %v1454_v58, %v840_v24  ;;  %v1388_v24 = vrot.slane %v1369_v5, %v1383_v7 }
 0x217   :  { %v1630_v30 = vpop.f32.mrb[4].mxu1 }
 0x218   :  { %v1732_v32 = vadd.f32 %v1731_v28, %v1630_v30  ;;  %v1210_v18 = vpop.f32.mrb[5].mxu1  ;;  %v1396_v28 = vrot.slane %v1379_v17, %v1383_v7 }
 0x219   :  { %v1734_v34 = vadd.f32 %v1733_v29, %v1210_v18 }
 0x21a   :  { %v1237_v35 = vadd.f32 %v1732_v32, %v1233_v33  ;;  %v1400_v33 = vrot.slane %v1362_v12, %v1383_v7 }
 0x21b   :  { %v1236_v36 = vadd.f32 %v1734_v34, %v1232_v21  ;;  %v1408_v34 = vrot.slane %v1378_v25, %v1383_v7 }
 0x21c   :  { %1240 = vadd.xlane.f32.xlu1 %v1237_v35  ;;  %v1243_v38 = vmul.f32 %v1237_v35, %v1237_v35 }
 0x21d   :  { %1238 = vadd.xlane.f32.xlu0 %v1236_v36  ;;  %v1242_v37 = vmul.f32 %v1236_v36, %v1236_v36 }
 0x221   :  { %1244 = vadd.xlane.f32.xlu0 %v1242_v37 }
 0x225   :  { %1246 = vadd.xlane.f32.xlu0 %v1243_v38  ;;  %v1404_v38 = vrot.slane %v1376_v19, %v1383_v7 }
 0x2a9   :  { %v1241_v41 = vpop.xlane.xlu1 %1240 }
 0x2aa   :  { %v1239_v39 = vpop.xlane.xlu0 %1238  ;;  %v1249_v45 = vmul.f32 0.03125, %v1241_v41  ;;  %v1412_v41 = vrot.slane %v1380_v10, %v1383_v7 }
 0x2ab   :  { %v1248_v40 = vmul.f32 0.03125, %v1239_v39 }
 0x2ac   :  { %v1253_v51 = vmul.f32 %v1249_v45, %v1249_v45  ;;  %v1259_v13 = vsub.f32 %v1237_v35, %v1249_v45 }
 0x2ad   :  { %v1252_v46 = vmul.f32 %v1248_v40, %v1248_v40  ;;  %v1258_v1 = vsub.f32 %v1236_v36, %v1248_v40 }
 0x2ae   :  { %v1245_v44 = vpop.xlane.xlu0 %1244 }
 0x2af   :  { %v1250_v47 = vmul.f32 0.03125, %v1245_v44 }
 0x2b1   :  { %v1254_v49 = vsub.f32 %v1250_v47, %v1252_v46 }
 0x2b2   :  { %v1247_v50 = vpop.xlane.xlu0 %1246 }
 0x2b3   :  { %v1256_v52 = vmax.f32 %v1254_v49, 0.0  ;;  %v1251_v53 = vmul.f32 0.03125, %v1247_v50 }
 0x2b5   :  { %v1260_v55 = vadd.f32 1e-05, %v1256_v52  ;;  %v1255_v56 = vsub.f32 %v1251_v53, %v1253_v51 }
 0x2b7   :  { %1768 = vrsqrt.f32 %v1260_v55  ;;  %v1257_v59 = vmax.f32 %v1255_v56, 0.0 }
 0x2b9   :  { %v1261_v62 = vadd.f32 1e-05, %v1257_v59 }
 0x2bb   :  { %1770 = vrsqrt.f32 %v1261_v62 }
 0x2c1   :  { %v1769_v3 = vpop.eup %1768 }
 0x2c2   :  { %v1264_v8 = vmul.f32 %v1769_v3, %v1258_v1 }
 0x2c4   :  { %v1273_v15 = vmul.f32 %v1455_v4, %v1264_v8 }
 0x2c5   :  { %v1771_v16 = vpop.eup %1770 }
 0x2c6   :  { %v1282_v22 = vadd.f32 %v1456_v9, %v1273_v15  ;;  %v1265_v23 = vmul.f32 %v1771_v16, %v1259_v13 }
 0x2c8   :  { %v1289_v58 = vcombine.high %v1282_v22, %v1282_v22  ;;  %v1296_v11 = vrot.slane %v1282_v22, %v1902_v31  ;;  %v1274_v27 = vmul.f32 %v1455_v4, %v1265_v23 }
 0x2ca   :  { %v1303_v29 = vrot.slane %v1289_v58, %v1902_v31  ;;  %v1304_v30 = vcombine.high %v1296_v11, %v1296_v11  ;;  %v1421_v32 = vadd.f32 %v1384_v20, %v1296_v11  ;;  %v1283_v18 = vadd.f32 %v1456_v9, %v1274_v27 }
 0x2cc   :  { %v1305_v21 = vcombine.high %v1303_v29, %v1303_v29  ;;  %v1422_v35 = vadd.f32 %v1388_v24, %v1304_v30  ;;  %v1423_v36 = vadd.f32 %v1392_v26, %v1303_v29  ;;  %1429 = vst [vmem:[#allocation2] sm:$0x3] %v1421_v32  ;;  %v1306_v37 = vcombine.high %v1283_v18, %v1283_v18 }
 0x2cd   :  { %v1313_v39 = vrot.slane %v1283_v18, %v1902_v31 }
 0x2ce   :  { %v1424_v40 = vadd.f32 %v1396_v28, %v1305_v21  ;;  %1430 = vst [vmem:[#allocation2 + $0x2] sm:$0x3] %v1422_v35  ;;  %1431 = vst [vmem:[#allocation2 + $0x4] sm:$0x3] %v1423_v36  ;;  %v1320_v42 = vrot.slane %v1306_v37, %v1902_v31 }
 0x2cf   :  { %v1321_v43 = vcombine.high %v1313_v39, %v1313_v39  ;;  %v1425_v44 = vadd.f32 %v1400_v33, %v1313_v39 }
 0x2d0   :  { %1432 = vst [vmem:[#allocation2 + $0x6] sm:$0x3] %v1424_v40  ;;  %v1322_v45 = vcombine.high %v1320_v42, %v1320_v42  ;;  %v1427_v46 = vadd.f32 %v1408_v34, %v1320_v42 }
 0x2d1   :  { %v1426_v47 = vadd.f32 %v1404_v38, %v1321_v43  ;;  %1433 = vst [vmem:[#allocation2 + $0x8] sm:$0x3] %v1425_v44 }
 0x2d2   :  { %v1428_v48 = vadd.f32 %v1412_v41, %v1322_v45  ;;  %1435 = vst [vmem:[#allocation2 + $0xc] sm:$0x3] %v1427_v46 }
 0x2d3   :  { %1434 = vst [vmem:[#allocation2 + $0xa] sm:$0x3] %v1426_v47 }
 0x2d4   :  { %1436 = vst [vmem:[#allocation2 + $0xe] sm:$0x3] %v1428_v48 }
 0x2d5   :  { %1783 = shalt.err (!%p1780_p4)
}
 0x2d6   :  { %s1784_s24 = scalar_lea.hbm %s2058_s8, 256 }
 0x2d7   :  { %p1785_p5 = scmp.ne.s32.totalorder %s2058_s8, %s1784_s24  ;;  %p1788_p6 = scmp.lt.u32.totalorder %s1784_s24, %s2058_s8 }
 0x2d9   :  { %p1790_p7 = pnand %p1788_p6, %p1785_p5 }
 0x2db   :  { %1793 = shalt.err (!%p1790_p7)
}
 0x2dc   :  { %s1801_s28 = smov 32   ;;  %s1802_s29 = smov 2  }
 0x2dd   :  { %1448 = dma.vmem_to_hbm [thread:$0]  %s1443_s7, 256, %s2058_s8, [#allocation3], %s1801_s28, %s1801_s28, %s1802_s29  }
 0x2de   :  { %1794 = dma.done.wait [#allocation3], 256  }
 0x2df   :  { %1795 = vsyncadd [#allocation3], 4294967040 }
 0x2e0   :  { %1452 = vsyncpa [#allocation3], 1 }

</bundles_post_ra>
